<compile_context>
chip_gen: v5e
topology: v5e:2x2
jax: 0.10.0
libtpu: 0.0.40
codegen_flags: <defaults>
</compile_context>

<pallas_src>
import functools

import jax
import jax.numpy as jnp
from jax.experimental import pallas as pl
from jax.experimental.pallas import tpu as pltpu


def _round_up(x, m):
    return ((x + m - 1) // m) * m


def value_net_kernel(xt_ref, w1_ref, b1_ref, w2_ref, b2_ref, o_ref):
    """Fused 2-layer value MLP on one batch tile, batch on the lane axis.

    xt_ref : (S, tile_b)  states, batch on lanes (lane-dense)
    w1_ref : (H, S)       layer-1 weight, torch Linear(S, H).weight layout
    b1_ref : (H, 1)       layer-1 bias column (broadcast over lanes)
    w2_ref : (H, 1)       layer-2 weight column (torch Linear(H,1).weight.T)
    b2_ref : (1, 1)       layer-2 bias scalar (SMEM)
    o_ref  : (1, tile_b)  per-state value, lane-dense (unmasked vst)
    """
    # Layer 1 on the MXU: (H, S) @ (S, tile_b) -> (H, tile_b).  Result is
    # already lane-dense along batch; no in-kernel transpose of h needed.
    h = jnp.dot(w1_ref[...], xt_ref[...], preferred_element_type=jnp.float32)
    h = jnp.maximum(h + b1_ref[...], 0.0)                      # bias + ReLU (VPU)
    # Layer 2 has one output unit: VPU multiply by the (H, 1) weight column
    # and an XLU sublane reduce over H -- no 1-row/1-column MXU matmul.
    out = jnp.sum(h * w2_ref[...], axis=0, keepdims=True)      # (1, tile_b)
    o_ref[...] = (out + b2_ref[0, 0]).astype(o_ref.dtype)
    # Padded batch lanes produce relu(b1)·w2 + b2; they are sliced off by the
    # wrapper and never reduced over.


def _choose_tiling(batch, block_b):
    """Lane-aligned batch tiling.  Batches that fit one tile but span >=256
    lanes are split into two equal tiles so dimension_semantics=("parallel",)
    can shard the grid across v7x's two TensorCores."""
    padded = _round_up(batch, 128)
    if padded <= block_b:
        if padded >= 256:
            tile_b = _round_up((padded + 1) // 2, 128)
            padded = 2 * tile_b
        else:
            tile_b = padded
    else:
        tile_b = block_b
        padded = _round_up(batch, tile_b)
    return tile_b, padded


def _vmem_limit_bytes(state_size, hidden, tile_b):
    """Rough f32 VMEM budget: double-buffered x/out tiles + resident weights +
    a few live (H, tile_b) intermediates.  ~2x headroom, capped at 48 MiB so
    we keep headroom inside v7x's 64 MiB physical VMEM (v5e/v6e have 128)."""
    sub = lambda r: _round_up(max(r, 1), 8)        # sublane padding
    lane = lambda c: _round_up(max(c, 1), 128)     # lane padding
    x_bufs = 2 * sub(state_size) * tile_b * 4
    o_bufs = 2 * sub(1) * tile_b * 4
    weights = (sub(hidden) * lane(state_size) + 2 * sub(hidden) * lane(1)) * 4
    h_live = 4 * sub(hidden) * tile_b * 4
    est = x_bufs + o_bufs + weights + h_live
    return int(min(48 * 2**20, max(2 * est, 16 * 2**20)))


@functools.partial(jax.jit, static_argnames=("block_b",))
def value_network_forward_t(x_t, w1, b1_col, w2_col, b2, *, block_b=16384):
    """Fast path: x_t is (state_size, batch) -- batch already on the lane axis.

    x_t    : (S, B) f32
    w1     : (H, S) f32   (torch Linear(S, H).weight, unchanged)
    b1_col : (H, 1) f32
    w2_col : (H, 1) f32   (torch Linear(H, 1).weight transposed to a column)
    b2     : (1, 1) f32   (held in SMEM)
    returns: (B, 1) f32   (same semantics as ValueNetwork.forward)
    """
    state_size, batch = x_t.shape
    hidden = w1.shape[0]

    tile_b, padded = _choose_tiling(batch, block_b)
    if padded != batch:
        x_t = jnp.pad(x_t, ((0, 0), (0, padded - batch)))

    # Grid-invariant operands: never re-fetched, so single-buffer them.
    resident = dict(pipeline_mode=pl.Buffered(1))

    out = pl.pallas_call(
        value_net_kernel,
        out_shape=jax.ShapeDtypeStruct((1, padded), jnp.float32),
        grid_spec=pltpu.PrefetchScalarGridSpec(
            num_scalar_prefetch=0,
            grid=(padded // tile_b,),
            in_specs=[
                pl.BlockSpec((state_size, tile_b), lambda i: (0, i)),        # x tile
                pl.BlockSpec((hidden, state_size), lambda i: (0, 0), **resident),
                pl.BlockSpec((hidden, 1), lambda i: (0, 0), **resident),     # b1
                pl.BlockSpec((hidden, 1), lambda i: (0, 0), **resident),     # w2
                pl.BlockSpec(memory_space=pltpu.MemorySpace.SMEM),           # b2
            ],
            out_specs=pl.BlockSpec((1, tile_b), lambda i: (0, i)),
        ),
        compiler_params=pltpu.CompilerParams(
            dimension_semantics=("parallel",),     # megacore-shardable on v7x
            vmem_limit_bytes=_vmem_limit_bytes(state_size, hidden, tile_b)),
    )(x_t, w1, b1_col, w2_col, b2)

    # (1, B) -> (B, 1) is a layout-preserving reshape (free).
    return out[0, :batch][:, None]


def value_network_forward(x, w1, b1_col, w2_col, b2, *, block_b=16384):
    """Convenience entry matching torch's (batch, state_size) input.

    Prefer value_network_forward_t and keep rollout states stored (S, B):
    the transpose here is a separate XLA op (extra HBM round trip)."""
    return value_network_forward_t(x.T, w1, b1_col, w2_col, b2, block_b=block_b)


def init_params(key, state_size, hidden_size):
    """Xavier-uniform weights, biases filled with 0.01
    (mirrors ValueNetwork.initalize_weights_biases)."""
    k1, k2 = jax.random.split(key)

    def xavier(k, shape, fan_in, fan_out):
        limit = jnp.sqrt(6.0 / (fan_in + fan_out))
        return jax.random.uniform(k, shape, jnp.float32,
                                  minval=-limit, maxval=limit)

    # Layer 1 kept in torch's native (out, in) layout -- exactly what the
    # transposed kernel wants on the MXU.
    w1 = xavier(k1, (hidden_size, state_size), state_size, hidden_size)
    b1_col = jnp.full((hidden_size, 1), 0.01, jnp.float32)
    # Layer 2 stored as an (H, 1) column (= torch Linear(H, 1).weight.T).
    w2_col = xavier(k2, (hidden_size, 1), hidden_size, 1)
    b2 = jnp.full((1, 1), 0.01, jnp.float32)
    return w1, b1_col, w2_col, b2


def ref_forward(x, w1, b1_col, w2_col, b2):
    """Pure-jnp reference matching the torch module ((B, S) -> (B, 1))."""
    h = jnp.maximum(x @ w1.T + b1_col[:, 0], 0.0)
    return h @ w2_col + b2[0, 0]


if __name__ == "__main__":
    key = jax.random.PRNGKey(0)
    kp, kx1, kx2 = jax.random.split(key, 3)

    state_size = 8
    hidden_size = 64    # default hidden_sizes=[64]

    w1, b1_col, w2_col, b2 = init_params(kp, state_size, hidden_size)

    # Small batch via the fast (S, B) entry point.
    x1_t = jax.random.normal(kx1, (state_size, 8), jnp.float32)
    out1 = jax.block_until_ready(
        value_network_forward_t(x1_t, w1, b1_col, w2_col, b2))
    assert out1.shape == (8, 1)
    assert jnp.allclose(out1, ref_forward(x1_t.T, w1, b1_col, w2_col, b2),
                        atol=1e-5), "mismatch (batch=8)"

    # Lane-unaligned batch via the (B, S) convenience entry; exercises padding
    # and the >=2-step parallel grid (300 -> two 256-lane tiles).
    x2 = jax.random.normal(kx2, (300, state_size), jnp.float32)
    out2 = jax.block_until_ready(
        value_network_forward(x2, w1, b1_col, w2_col, b2))
    assert out2.shape == (300, 1)
    assert jnp.allclose(out2, ref_forward(x2, w1, b1_col, w2_col, b2),
                        atol=1e-5), "mismatch (batch=300)"

    print("KERNEL_OK")
</pallas_src>

<mosaic_0001>
module attributes {stable_mosaic.version = 11 : i64} {
  func.func @value_net_kernel(%arg0: i32, %arg1: memref<8x128xf32, #tpu.memory_space<vmem>>, %arg2: memref<64x8xf32, #tpu.memory_space<vmem>>, %arg3: memref<64x1xf32, #tpu.memory_space<vmem>>, %arg4: memref<64x1xf32, #tpu.memory_space<vmem>>, %arg5: memref<1x1xf32, #tpu.memory_space<smem>>, %arg6: memref<1x128xf32, #tpu.memory_space<vmem>>) attributes {dimension_semantics = [#tpu.dimension_semantics<parallel>], iteration_bounds = array<i64: 1>, scalar_prefetch = 0 : i64, scratch_operands = 0 : i64, tpu.core_type = #tpu.core_type<tc>, window_params = [{transform_indices = @transform_0, window_bounds = array<i64: 8, 128>}, {pipeline_mode = #tpu.pipeline_mode<synchronous>, transform_indices = @transform_1, window_bounds = array<i64: 64, 8>}, {pipeline_mode = #tpu.pipeline_mode<synchronous>, transform_indices = @transform_2, window_bounds = array<i64: 64, 1>}, {pipeline_mode = #tpu.pipeline_mode<synchronous>, transform_indices = @transform_3, window_bounds = array<i64: 64, 1>}, {transform_indices = @transform_4, window_bounds = array<i64: 1, 1>}, {transform_indices = @transform_5, window_bounds = array<i64: 1, 128>}]} {
    %c0 = arith.constant 0 : index
    %c0_0 = arith.constant 0 : index
    %0 = vector.load %arg2[%c0, %c0_0] : memref<64x8xf32, #tpu.memory_space<vmem>>, vector<64x8xf32>
    %c0_1 = arith.constant 0 : index
    %c0_2 = arith.constant 0 : index
    %1 = vector.load %arg1[%c0_1, %c0_2] : memref<8x128xf32, #tpu.memory_space<vmem>>, vector<8x128xf32>
    %cst = arith.constant dense<0.000000e+00> : vector<64x128xf32>
    %2 = tpu.matmul %0, %1, %cst {dimension_numbers = #tpu.dot_dimension_numbers<[1], [0], [0], [1], [0, 0, 1, 1], [], []>} : vector<64x8xf32>, vector<8x128xf32>, vector<64x128xf32> -> vector<64x128xf32>
    %c0_3 = arith.constant 0 : index
    %c0_4 = arith.constant 0 : index
    %3 = vector.load %arg3[%c0_3, %c0_4] : memref<64x1xf32, #tpu.memory_space<vmem>>, vector<64x1xf32>
    %4 = vector.broadcast %3 : vector<64x1xf32> to vector<64x128xf32>
    %5 = arith.addf %2, %4 : vector<64x128xf32>
    %cst_5 = arith.constant 0.000000e+00 : f32
    %6 = vector.broadcast %cst_5 : f32 to vector<64x128xf32>
    %7 = arith.maximumf %5, %6 : vector<64x128xf32>
    %c0_6 = arith.constant 0 : index
    %c0_7 = arith.constant 0 : index
    %8 = vector.load %arg4[%c0_6, %c0_7] : memref<64x1xf32, #tpu.memory_space<vmem>>, vector<64x1xf32>
    %9 = vector.broadcast %8 : vector<64x1xf32> to vector<64x128xf32>
    %10 = arith.mulf %7, %9 : vector<64x128xf32>
    %cst_8 = arith.constant dense<0.000000e+00> : vector<128xf32>
    %11 = vector.multi_reduction <add>, %10, %cst_8 [0] : vector<64x128xf32> to vector<128xf32>
    %12 = vector.shape_cast %11 : vector<128xf32> to vector<1x128xf32>
    %c0_9 = arith.constant 0 : index
    %c0_10 = arith.constant 0 : index
    %13 = memref.load %arg5[%c0_9, %c0_10] : memref<1x1xf32, #tpu.memory_space<smem>>
    %14 = vector.broadcast %13 : f32 to vector<1x128xf32>
    %15 = arith.addf %12, %14 : vector<1x128xf32>
    %c0_11 = arith.constant 0 : index
    %c0_12 = arith.constant 0 : index
    %16 = vector.load %arg6[%c0_11, %c0_12] : memref<1x128xf32, #tpu.memory_space<vmem>>, vector<1x128xf32>
    tpu.vector_store %arg6[%c0_11, %c0_12], %15 {strides = array<i32>} : memref<1x128xf32, #tpu.memory_space<vmem>>, vector<1x128xf32>,
    return
  }
  func.func @transform_0(%arg0: i32) -> (i32, i32) {
    %c0_i32 = arith.constant 0 : i32
    %c0_i32_0 = arith.constant 0 : i32
    return %c0_i32, %arg0 : i32, i32
  }
  func.func @transform_1(%arg0: i32) -> (i32, i32) {
    %c0_i32 = arith.constant 0 : i32
    %c0_i32_0 = arith.constant 0 : i32
    %c0_i32_1 = arith.constant 0 : i32
    return %c0_i32, %c0_i32_0 : i32, i32
  }
  func.func @transform_2(%arg0: i32) -> (i32, i32) {
    %c0_i32 = arith.constant 0 : i32
    %c0_i32_0 = arith.constant 0 : i32
    %c0_i32_1 = arith.constant 0 : i32
    return %c0_i32, %c0_i32_0 : i32, i32
  }
  func.func @transform_3(%arg0: i32) -> (i32, i32) {
    %c0_i32 = arith.constant 0 : i32
    %c0_i32_0 = arith.constant 0 : i32
    %c0_i32_1 = arith.constant 0 : i32
    return %c0_i32, %c0_i32_0 : i32, i32
  }
  func.func @transform_4(%arg0: i32) -> (i32, i32) {
    %c0_i32 = arith.constant 0 : i32
    %c0_i32_0 = arith.constant 0 : i32
    %c0_i32_1 = arith.constant 0 : i32
    return %c0_i32, %c0_i32_0 : i32, i32
  }
  func.func @transform_5(%arg0: i32) -> (i32, i32) {
    %c0_i32 = arith.constant 0 : i32
    %c0_i32_0 = arith.constant 0 : i32
    return %c0_i32, %arg0 : i32, i32
  }
}

</mosaic_0001>

<bundles_post_ra>
// kernel: value_network_forward_t.1
= control target key start
LH: loop header
LB: loop body
LE: loop exit
PB: predicated region body
PF: predicated region fallthrough
CT: control target
= control target key end

     0   :  { %v244_v0 = vmov 0   ;;  %vm78_vm0 = vcmask 64512   ;;  %s364_s2 = inlined_call_operand.vmem [shape: f32[64,1], index: 2, kind: input, shape index: {}]   ;;  %s365_s0 = inlined_call_operand.vmem [shape: f32[8,128], index: 0, kind: input, shape index: {}]   ;;  %s366_s1 = inlined_call_operand.vmem [shape: f32[64,8], index: 1, kind: input, shape index: {}]   ;;  %s367_s3 = inlined_call_operand.vmem [shape: f32[64,1], index: 3, kind: input, shape index: {}]   ;;  %s368_s4 = inlined_call_operand.<no memory space> [shape: f32[1,1], index: 4, kind: input, shape index: {}]   ;;  %s369_s5 = inlined_call_operand.vmem [shape: f32[1,128], index: 5, kind: output, shape index: {}]  }
   0x1   :  { %243 = vset.pattern.permute.xlu2 %v244_v0  ;;  %242 = vset.pattern.permute.xlu1 %v244_v0  ;;  %v34_v1 = vld [vmem:[%s364_s2 + $0x20] sm:$0xff]  ;;  %v32_v2 = vld [vmem:[%s364_s2 + $0x10] sm:$0xff]  ;;  %v33_v10 = vld [vmem:[%s364_s2 + $0x18] sm:$0xff] }
   0x2   :  { %v30_v3 = vld [vmem:[%s364_s2] sm:$0xff]  ;;  %241 = vset.pattern.permute.xlu0 %v244_v0  ;;  %60 = vperm.xlu2 %243, %v34_v1   ;;  %v23_v6 = vld [vmem:[%s366_s1 + $0x10] sm:$0xff]  ;;  %v31_v11 = vld [vmem:[%s364_s2 + $0x8] sm:$0xff] }
   0x3   :  { %v29_v4 = vld [vmem:[%s365_s0] sm:$0xff]  ;;  %50 = vperm.xlu1 %242, %v32_v2   ;;  %40 = vperm.xlu0 %241, %v30_v3   ;;  %v27_v8 = vld [vmem:[%s366_s1 + $0x30] sm:$0xff]  ;;  %v22_v12 = vld [vmem:[%s366_s1 + $0x8] sm:$0xff] }
   0x4   :  { %v21_v5 = vld [vmem:[%s366_s1] sm:$0xff]  ;;  %118 = vmatpush.msra.mxu0 %v29_v4  ;;  %237 = vmatpush.msra.mxu1 %v29_v4  ;;  %v24_v13 = vld [vmem:[%s366_s1 + $0x18] sm:$0xff]  ;;  %v26_v14 = vld [vmem:[%s366_s1 + $0x28] sm:$0xff] }
   0x5   :  { %v25_v7 = vld [vmem:[%s366_s1 + $0x20] sm:$0xff]  ;;  %238 = vmatpush.msra.mxu2 %v29_v4  ;;  %229 = vmatmul.msk.f32.vlgmr.msra.gmra.mxu0 %vm78_vm0, %v21_v5  ;;  %v28_v15 = vld [vmem:[%s366_s1 + $0x38] sm:$0xff]  ;;  %v35_v16 = vld [vmem:[%s364_s2 + $0x28] sm:$0xff] }
   0x6   :  { %231 = vmatmul.msk.f32.vlgmr.msra.gmra.mxu1 %vm78_vm0, %v23_v6  ;;  %233 = vmatmul.msk.f32.vlgmr.msra.gmra.mxu2 %vm78_vm0, %v25_v7  ;;  %v152_v9 = vld [vmem:[%s367_s3] sm:$0xff]  ;;  %v154_v17 = vld [vmem:[%s367_s3 + $0x10] sm:$0xff]  ;;  %v153_v18 = vld [vmem:[%s367_s3 + $0x8] sm:$0xff] }
   0x7   :  { %239 = vmatpush.msra.mxu3 %v29_v4  ;;  %v156_v19 = vld [vmem:[%s367_s3 + $0x20] sm:$0xff]  ;;  %v36_v20 = vld [vmem:[%s364_s2 + $0x30] sm:$0xff]  ;;  %v155_v21 = vld [vmem:[%s367_s3 + $0x18] sm:$0xff] }
   0x8   :  { %235 = vmatmul.msk.f32.vlgmr.msra.gmra.mxu3 %vm78_vm0, %v27_v8  ;;  %v158_v22 = vld [vmem:[%s367_s3 + $0x30] sm:$0xff]  ;;  %v157_v23 = vld [vmem:[%s367_s3 + $0x28] sm:$0xff]  ;;  %v37_v24 = vld [vmem:[%s364_s2 + $0x38] sm:$0xff] }
   0x9   :  { %v159_v25 = vld [vmem:[%s367_s3 + $0x38] sm:$0xff] }
   0xa   :  { %162 = vperm.xlu2 %243, %v152_v9  }
   0xb   :  { %55 = vperm.xlu1 %242, %v33_v10   ;;  %45 = vperm.xlu0 %241, %v31_v11  }
   0xd   :  { %230 = vmatmul.msk.f32.gmra.mxu0 %vm78_vm0, %v22_v12 }
   0xe   :  { %232 = vmatmul.msk.f32.gmra.mxu1 %vm78_vm0, %v24_v13  ;;  %234 = vmatmul.msk.f32.gmra.mxu2 %vm78_vm0, %v26_v14 }
  0x10   :  { %236 = vmatmul.msk.f32.gmra.mxu3 %vm78_vm0, %v28_v15 }
  0x12   :  { %65 = vperm.xlu2 %243, %v35_v16  }
  0x13   :  { %172 = vperm.xlu1 %242, %v154_v17   ;;  %167 = vperm.xlu0 %241, %v153_v18  }
  0x1a   :  { %182 = vperm.xlu2 %243, %v156_v19  }
  0x1b   :  { %70 = vperm.xlu1 %242, %v36_v20   ;;  %177 = vperm.xlu0 %241, %v155_v21  }
  0x22   :  { %192 = vperm.xlu2 %243, %v158_v22   ;;  %v222_v22 = vstv %s368_s4 }
  0x23   :  { %187 = vperm.xlu1 %242, %v157_v23   ;;  %75 = vperm.xlu0 %241, %v37_v24  }
  0x2b   :  { %197 = vperm.xlu0 %241, %v159_v25  }
  0x5c   :  { %v61_v26 = vpop.permute.xlu2 %60 }
  0x64   :  { %v163_v29 = vpop.permute.xlu2 %162 }
  0x6c   :  { %v66_v36 = vpop.permute.xlu2 %65 }
  0x74   :  { %v183_v54 = vpop.permute.xlu2 %182 }
  0x75   :  { %v51_v27 = vpop.permute.xlu1 %50  ;;  %v41_v28 = vpop.permute.xlu0 %40 }
  0x7c   :  { %v193_v10 = vpop.permute.xlu2 %192 }
  0x7d   :  { %v56_v30 = vpop.permute.xlu1 %55  ;;  %v46_v31 = vpop.permute.xlu0 %45 }
  0x82   :  { %v120_v32 = vpop.f32.mrf.mxu0 }
  0x83   :  { %v126_v33 = vpop.f32.mrf.mxu1  ;;  %v121_v37 = vadd.f32 %v120_v32, %v41_v28 }
  0x84   :  { %v127_v38 = vadd.f32 %v126_v33, %v51_v27 }
  0x85   :  { %v173_v34 = vpop.permute.xlu1 %172  ;;  %v168_v35 = vpop.permute.xlu0 %167  ;;  %v144_v41 = vmax.f32 %v121_v37, 0.0 }
  0x86   :  { %v146_v46 = vmax.f32 %v127_v38, 0.0 }
  0x87   :  { %v200_v51 = vmul.f32 %v163_v29, %v144_v41 }
  0x88   :  { %v202_v55 = vmul.f32 %v173_v34, %v146_v46 }
  0x89   :  { %v132_v39 = vpop.f32.mrf.mxu2 }
  0x8a   :  { %v123_v40 = vpop.f32.mrf.mxu0  ;;  %v133_v47 = vadd.f32 %v132_v39, %v61_v26 }
  0x8b   :  { %v124_v42 = vadd.f32 %v123_v40, %v46_v31  ;;  %v129_v43 = vpop.f32.mrf.mxu1  ;;  %v138_v44 = vpop.f32.mrf.mxu3 }
  0x8c   :  { %v130_v45 = vadd.f32 %v129_v43, %v56_v30  ;;  %v148_v56 = vmax.f32 %v133_v47, 0.0 }
  0x8d   :  { %v145_v48 = vmax.f32 %v124_v42, 0.0  ;;  %v71_v49 = vpop.permute.xlu1 %70  ;;  %v178_v50 = vpop.permute.xlu0 %177 }
  0x8e   :  { %v147_v53 = vmax.f32 %v130_v45, 0.0  ;;  %v139_v62 = vadd.f32 %v138_v44, %v71_v49  ;;  %v204_v1 = vmul.f32 %v183_v54, %v148_v56 }
  0x8f   :  { %v201_v52 = vmul.f32 %v168_v35, %v145_v48 }
  0x90   :  { %v203_v60 = vmul.f32 %v178_v50, %v147_v53  ;;  %v150_v7 = vmax.f32 %v139_v62, 0.0 }
  0x91   :  { %v208_v57 = vadd.f32 %v201_v52, %v200_v51  ;;  %v135_v58 = vpop.f32.mrf.mxu2 }
  0x92   :  { %v136_v59 = vadd.f32 %v135_v58, %v66_v36  ;;  %v206_v11 = vmul.f32 %v193_v10, %v150_v7 }
  0x93   :  { %v209_v61 = vadd.f32 %v208_v57, %v202_v55  ;;  %v141_v0 = vpop.f32.mrf.mxu3 }
  0x94   :  { %v149_v63 = vmax.f32 %v136_v59, 0.0 }
  0x95   :  { %v210_v2 = vadd.f32 %v209_v61, %v203_v60  ;;  %v188_v3 = vpop.permute.xlu1 %187  ;;  %v76_v4 = vpop.permute.xlu0 %75 }
  0x96   :  { %v205_v5 = vmul.f32 %v188_v3, %v149_v63  ;;  %v142_v8 = vadd.f32 %v141_v0, %v76_v4 }
  0x97   :  { %v211_v6 = vadd.f32 %v210_v2, %v204_v1 }
  0x98   :  { %v151_v12 = vmax.f32 %v142_v8, 0.0 }
  0x99   :  { %v212_v9 = vadd.f32 %v211_v6, %v205_v5 }
  0x9b   :  { %v213_v15 = vadd.f32 %v212_v9, %v206_v11 }
  0x9d   :  { %v198_v13 = vpop.permute.xlu0 %197 }
  0x9e   :  { %v207_v14 = vmul.f32 %v198_v13, %v151_v12 }
  0xa0   :  { %v214_v16 = vadd.f32 %v213_v15, %v207_v14 }
  0xa2   :  { %v215_v17 = vrot.slane %v214_v16, 4 }
  0xa4   :  { %v216_v18 = vadd.f32 %v215_v17, %v214_v16 }
  0xa6   :  { %v217_v19 = vrot.slane %v216_v18, 2 }
  0xa8   :  { %v218_v20 = vadd.f32 %v217_v19, %v216_v18 }
  0xaa   :  { %v219_v21 = vrot.slane %v218_v20, 1 }
  0xac   :  { %v220_v23 = vadd.f32 %v219_v21, %v218_v20 }
  0xae   :  { %v223_v24 = vadd.f32 %v222_v22, %v220_v23 }
  0xb0   :  { %224 = vst [vmem:[%s369_s5] sm:$0x1] %v223_v24 }

</bundles_post_ra>
